<compile_context>
chip_gen: v7x
topology: tpu7x:2x2x1
jax: 0.10.0
libtpu: 0.0.40
codegen_flags: <defaults>
</compile_context>

<pallas_src>
import functools
import math

import jax
import jax.numpy as jnp
from jax.experimental import pallas as pl
from jax.experimental.pallas import tpu as pltpu

EPS = 0.0                 # GINConv default eps (train_eps=False)
_ROW_ALIGN = 16           # bf16 sublane tile
_LANE = 128
_FUSED_MAX_N = 256        # graphs up to this many nodes use the fused call


def _round_up(v, m):
    return (v + m - 1) // m * m


def _vmem_limit_bytes():
    """Generation-aware scoped-VMEM limit (v7x has only 64 MiB physical)."""
    cap = 128 * 1024 * 1024
    try:
        cap = int(getattr(pltpu.get_tpu_info(), "vmem_capacity_bytes", cap))
    except Exception:
        cap = 64 * 1024 * 1024          # unknown chip -> be conservative
    if cap <= 64 * 1024 * 1024:
        return 48 * 1024 * 1024         # v7x: leave headroom for compiler scratch
    return 100 * 1024 * 1024            # v5e / v6e: 128 MiB physical


# ---------------------------------------------------------------------------
# Kernels
# ---------------------------------------------------------------------------
def _gin_fused_kernel(a_ref, x_ref, w1_ref, b1_ref, w2_ref, b2_ref, o_ref):
    """Whole-graph fused 2-layer GIN (small graphs; single grid point).

    A' and x are bf16 (native MXU operands); accumulation is f32 via
    preferred_element_type.  Projections (small K) and the output stay f32.
    """
    a = a_ref[...]                                               # bf16
    agg1 = jnp.dot(a, x_ref[...], preferred_element_type=jnp.float32)
    h1 = jnp.dot(agg1, w1_ref[...],
                 preferred_element_type=jnp.float32) + b1_ref[...]
    xr = jnp.maximum(h1, 0.0).astype(jnp.bfloat16)
    agg2 = jnp.dot(a, xr, preferred_element_type=jnp.float32)
    o_ref[...] = (jnp.dot(agg2, w2_ref[...],
                          preferred_element_type=jnp.float32) + b2_ref[...])


def _gin_layer_kernel(ktab_ref, kcnt_ref, a_ref, x_ref, w_ref, b_ref, o_ref,
                      acc_ref, *, apply_relu):
    """One GINConv layer; grid = (row blocks, k tiles).

    a_ref : (TM, TK) bf16 tile of A' (tile column picked by ktab in index_map)
    x_ref : (TK, D_in) bf16 tile of the input features
    acc_ref: (TM, D_in) f32 aggregation accumulator (VMEM scratch)
    """
    i = pl.program_id(0)
    k = pl.program_id(1)

    @pl.when(k == 0)
    def _():
        acc_ref[...] = jnp.zeros_like(acc_ref)

    # Only the first kcnt[i] grid steps correspond to nonzero A' tiles; padded
    # steps repeat the previous block index (no re-DMA) and skip the MXU work.
    @pl.when(k < kcnt_ref[i])
    def _():
        acc_ref[...] += jnp.dot(a_ref[...], x_ref[...],
                                preferred_element_type=jnp.float32)

    @pl.when(k == pl.num_programs(1) - 1)
    def _():
        h = jnp.dot(acc_ref[...], w_ref[...],
                    preferred_element_type=jnp.float32) + b_ref[...]
        if apply_relu:
            h = jnp.maximum(h, 0.0)
        o_ref[...] = h.astype(o_ref.dtype)


def _gin_layer_call(ktab, kcnt, adj, xin, w, b, *, tm, tk, apply_relu,
                    out_dtype, vmem_limit):
    n_pad = adj.shape[0]
    d_in = xin.shape[1]
    d_out = w.shape[1]
    grid = (n_pad // tm, n_pad // tk)
    kernel = functools.partial(_gin_layer_kernel, apply_relu=apply_relu)
    return pl.pallas_call(
        kernel,
        out_shape=jax.ShapeDtypeStruct((n_pad, d_out), out_dtype),
        grid_spec=pltpu.PrefetchScalarGridSpec(
            num_scalar_prefetch=2,              # ktab, kcnt -> SMEM
            grid=grid,
            in_specs=[
                # A' tile: column index comes from the compacted nonzero list.
                pl.BlockSpec((tm, tk), lambda i, k, kt, kc: (i, kt[i, k])),
                # matching x row-tile
                pl.BlockSpec((tk, d_in), lambda i, k, kt, kc: (kt[i, k], 0)),
                pl.BlockSpec((d_in, d_out), lambda i, k, kt, kc: (0, 0)),   # W
                pl.BlockSpec((1, d_out), lambda i, k, kt, kc: (0, 0)),      # b
            ],
            out_specs=pl.BlockSpec((tm, d_out), lambda i, k, kt, kc: (i, 0)),
            scratch_shapes=[pltpu.VMEM((tm, d_in), jnp.float32)],
        ),
        compiler_params=pltpu.CompilerParams(
            dimension_semantics=("parallel", "arbitrary"),
            vmem_limit_bytes=vmem_limit,
        ),
    )(ktab, kcnt, adj, xin, w, b)


# ---------------------------------------------------------------------------
# Block-sparsity map (computed from edge_index in the wrapper)
# ---------------------------------------------------------------------------
def _nonzero_tile_map(src, dst, n, n_pad, tm, tk):
    """Per-row-block compacted list of nonzero (tm, tk) tile columns of A'.

    Returns ktab[int32, (R, C)] (padded slots repeat the last valid column so
    consecutive grid steps keep the same block index -> no redundant DMA) and
    kcnt[int32, (R,)] = number of valid entries per row block.
    """
    R = n_pad // tm
    C = n_pad // tk
    nz = jnp.zeros((R, C), jnp.bool_)
    nz = nz.at[dst // tm, src // tk].set(True)      # edge j->i lands in A[dst, src]
    node = jnp.arange(n, dtype=jnp.int32)
    nz = nz.at[node // tm, node // tk].set(True)    # folded (1+eps) self term
    cols = jnp.where(nz, jnp.arange(C, dtype=jnp.int32)[None, :], C)
    ktab = jnp.sort(cols, axis=1)                   # nonzero columns first
    kcnt = nz.sum(axis=1).astype(jnp.int32)
    last = jnp.take_along_axis(ktab, jnp.maximum(kcnt - 1, 0)[:, None], axis=1)
    last = jnp.where(kcnt[:, None] > 0, last, 0)
    ktab = jnp.where(ktab >= C, last, ktab).astype(jnp.int32)
    return ktab, kcnt


# ---------------------------------------------------------------------------
# Forward wrapper
# ---------------------------------------------------------------------------
def gin_forward(x, edge_index, w1, b1, w2, b2, *, eps=EPS, row_tile=1024,
                k_tile=512, force_tiled=False):
    """x: [N, D_in] f32; edge_index: [2, E] int (row0=src, row1=dst).

    Linear weights are stored [in_dim, out_dim] (transposed vs torch), so the
    kernels compute y = x @ W + b.
    """
    n, d_in = x.shape
    hid = w1.shape[1]
    d_out = w2.shape[1]

    d_in_p = _round_up(d_in, _LANE)
    hid_p = _round_up(hid, _LANE)
    d_out_p = _round_up(d_out, _LANE)
    vmem_limit = _vmem_limit_bytes()

    src = edge_index[0].astype(jnp.int32)
    dst = edge_index[1].astype(jnp.int32)
    diag = jnp.arange(n, dtype=jnp.int32)

    use_fused = (not force_tiled) and n <= _FUSED_MAX_N
    if use_fused:
        n_pad = _round_up(n, _ROW_ALIGN)
        tm = tk = n_pad
    else:
        tm = _round_up(max(1, min(row_tile, n)), _ROW_ALIGN)
        tk = _round_up(max(1, min(k_tile, n)), _LANE)
        n_pad = _round_up(n, (tm * tk) // math.gcd(tm, tk))

    # A' = A + (1+eps) I, built directly in bf16 (exact for small integer edge
    # multiplicities and eps=0); halves the dominant O(N^2) HBM traffic and
    # avoids an f32 build + cast pass.
    one = jnp.bfloat16(1.0)
    adj = (jnp.zeros((n_pad, n_pad), jnp.bfloat16)
           .at[dst, src].add(one)
           .at[diag, diag].add(jnp.bfloat16(1.0 + eps)))

    def pad2(a, rows, cols, dtype):
        a = a.astype(dtype)
        return jnp.pad(a, ((0, rows - a.shape[0]), (0, cols - a.shape[1])))

    xp = pad2(x, n_pad, d_in_p, jnp.bfloat16)        # bf16 MXU operand
    w1p = pad2(w1, d_in_p, hid_p, jnp.float32)
    w2p = pad2(w2, hid_p, d_out_p, jnp.float32)
    b1p = jnp.pad(b1.astype(jnp.float32), (0, hid_p - hid)).reshape(1, hid_p)
    b2p = jnp.pad(b2.astype(jnp.float32), (0, d_out_p - d_out)).reshape(1, d_out_p)

    if use_fused:
        # Small graph: single fused 2-layer call, everything VMEM resident.
        vmem = pl.BlockSpec(memory_space=pltpu.MemorySpace.VMEM)
        out = pl.pallas_call(
            _gin_fused_kernel,
            out_shape=jax.ShapeDtypeStruct((n_pad, d_out_p), jnp.float32),
            in_specs=[vmem] * 6,
            out_specs=vmem,
            compiler_params=pltpu.CompilerParams(vmem_limit_bytes=vmem_limit),
        )(adj, xp, w1p, b1p, w2p, b2p)
    else:
        # K-tiled, block-sparse-skipping path; one pallas_call per layer
        # (layer-2's aggregation needs all of relu(x1), so layers can't be
        # row-fused).  Layer-1 activations are handed off in bf16.
        ktab, kcnt = _nonzero_tile_map(src, dst, n, n_pad, tm, tk)
        xr = _gin_layer_call(ktab, kcnt, adj, xp, w1p, b1p, tm=tm, tk=tk,
                             apply_relu=True, out_dtype=jnp.bfloat16,
                             vmem_limit=vmem_limit)
        out = _gin_layer_call(ktab, kcnt, adj, xr, w2p, b2p, tm=tm, tk=tk,
                              apply_relu=False, out_dtype=jnp.float32,
                              vmem_limit=vmem_limit)

    # TODO(synk): per-layer matmul-order choice (project before aggregating
    # when d_out < d_in) is not implemented; irrelevant for dims <= 128.
    return out[:n, :d_out]


# ---------------------------------------------------------------------------
# Reference / init / demo
# ---------------------------------------------------------------------------
def _linear_init(key, in_dim, out_dim):
    """torch.nn.Linear-style init: U(-1/sqrt(fan_in), 1/sqrt(fan_in))."""
    kw, kb = jax.random.split(key)
    bound = 1.0 / jnp.sqrt(jnp.float32(in_dim))
    w = jax.random.uniform(kw, (in_dim, out_dim), jnp.float32, -bound, bound)
    b = jax.random.uniform(kb, (out_dim,), jnp.float32, -bound, bound)
    return w, b


def gin_reference(x, edge_index, w1, b1, w2, b2, eps=EPS):
    """Pure-JAX f32 reference mirroring torch_geometric GINConv semantics."""
    n = x.shape[0]
    src, dst = edge_index[0], edge_index[1]
    adj = jnp.zeros((n, n), jnp.float32).at[dst, src].add(1.0)
    h1 = ((1.0 + eps) * x + adj @ x) @ w1 + b1
    xr = jnp.maximum(h1, 0.0)
    h2 = ((1.0 + eps) * xr + adj @ xr) @ w2 + b2
    return h2


if __name__ == "__main__":
    key = jax.random.PRNGKey(0)
    k_x, k_e1, k_e2, k_l1, k_l2 = jax.random.split(key, 5)

    # Small shapes: 40 nodes, in_dim=16, hidden_dim=32, out_dim=16, 80 edges.
    N, IN_DIM, HID_DIM, OUT_DIM, E = 40, 16, 32, 16, 80

    x = jax.random.normal(k_x, (N, IN_DIM), jnp.float32)
    edge_index = jnp.stack(
        [
            jax.random.randint(k_e1, (E,), 0, N, jnp.int32),
            jax.random.randint(k_e2, (E,), 0, N, jnp.int32),
        ],
        axis=0,
    )

    w1, b1 = _linear_init(k_l1, IN_DIM, HID_DIM)   # conv1.nn = Linear(in, hidden)
    w2, b2 = _linear_init(k_l2, HID_DIM, OUT_DIM)  # conv2.nn = Linear(hidden, out)

    ref = gin_reference(x, edge_index, w1, b1, w2, b2)

    # Tolerance is deliberately loose vs. the f32 reference: the aggregation
    # matmul uses bf16 operands (f32 accumulation), ~1e-2 relative error.
    ATOL, RTOL = 1e-1, 5e-2

    # Path 1: small-graph fused single-call kernel.
    out_fused = jax.block_until_ready(gin_forward(x, edge_index, w1, b1, w2, b2))
    assert out_fused.shape == (N, OUT_DIM)
    assert jnp.allclose(out_fused, ref, atol=ATOL, rtol=RTOL), \
        float(jnp.abs(out_fused - ref).max())

    # Path 2: K-tiled, block-sparse-skipping path on the same tiny graph
    # (exercises grid > 1, padded row blocks with kcnt == 0).
    out_tiled = jax.block_until_ready(
        gin_forward(x, edge_index, w1, b1, w2, b2, row_tile=16, k_tile=128,
                    force_tiled=True))
    assert out_tiled.shape == (N, OUT_DIM)
    assert jnp.allclose(out_tiled, ref, atol=ATOL, rtol=RTOL), \
        float(jnp.abs(out_tiled - ref).max())

    # Path 3: ring graph with several k-tiles per row block so empty A' tiles
    # are actually skipped via the scalar-prefetch tile map.
    N2 = 300
    x2 = jax.random.normal(k_x, (N2, IN_DIM), jnp.float32)
    nodes = jnp.arange(N2, dtype=jnp.int32)
    edge_index2 = jnp.stack([nodes, (nodes + 1) % N2], axis=0)
    ref2 = gin_reference(x2, edge_index2, w1, b1, w2, b2)
    out2 = jax.block_until_ready(
        gin_forward(x2, edge_index2, w1, b1, w2, b2, row_tile=128, k_tile=128,
                    force_tiled=True))
    assert out2.shape == (N2, OUT_DIM)
    assert jnp.allclose(out2, ref2, atol=ATOL, rtol=RTOL), \
        float(jnp.abs(out2 - ref2).max())

    # TODO(synk): `decode` (edge-score dot products on embeddings) is a separate
    # method, not part of forward(); left unimplemented.
    print("KERNEL_OK")
</pallas_src>

<mosaic_0001>
module attributes {stable_mosaic.version = 11 : i64} {
  func.func @_gin_fused_kernel(%arg0: memref<48x48xbf16, #tpu.memory_space<vmem>>, %arg1: memref<48x128xbf16, #tpu.memory_space<vmem>>, %arg2: memref<128x128xf32, #tpu.memory_space<vmem>>, %arg3: memref<1x128xf32, #tpu.memory_space<vmem>>, %arg4: memref<128x128xf32, #tpu.memory_space<vmem>>, %arg5: memref<1x128xf32, #tpu.memory_space<vmem>>, %arg6: memref<48x128xf32, #tpu.memory_space<vmem>>) attributes {dimension_semantics = [], scalar_prefetch = 0 : i64, scratch_operands = 0 : i64, tpu.core_type = #tpu.core_type<tc>} {
    %c0 = arith.constant 0 : index
    %c0_0 = arith.constant 0 : index
    %0 = vector.load %arg0[%c0, %c0_0] : memref<48x48xbf16, #tpu.memory_space<vmem>>, vector<48x48xbf16>
    %c0_1 = arith.constant 0 : index
    %c0_2 = arith.constant 0 : index
    %1 = vector.load %arg1[%c0_1, %c0_2] : memref<48x128xbf16, #tpu.memory_space<vmem>>, vector<48x128xbf16>
    %cst = arith.constant dense<0.000000e+00> : vector<48x128xf32>
    %2 = tpu.matmul %0, %1, %cst {dimension_numbers = #tpu.dot_dimension_numbers<[1], [0], [0], [1], [0, 0, 1, 1], [], []>} : vector<48x48xbf16>, vector<48x128xbf16>, vector<48x128xf32> -> vector<48x128xf32>
    %c0_3 = arith.constant 0 : index
    %c0_4 = arith.constant 0 : index
    %3 = vector.load %arg2[%c0_3, %c0_4] : memref<128x128xf32, #tpu.memory_space<vmem>>, vector<128x128xf32>
    %cst_5 = arith.constant dense<0.000000e+00> : vector<48x128xf32>
    %4 = tpu.matmul %2, %3, %cst_5 {dimension_numbers = #tpu.dot_dimension_numbers<[1], [0], [0], [1], [0, 0, 1, 1], [], []>} : vector<48x128xf32>, vector<128x128xf32>, vector<48x128xf32> -> vector<48x128xf32>
    %c0_6 = arith.constant 0 : index
    %c0_7 = arith.constant 0 : index
    %5 = vector.load %arg3[%c0_6, %c0_7] : memref<1x128xf32, #tpu.memory_space<vmem>>, vector<1x128xf32>
    %6 = vector.broadcast %5 : vector<1x128xf32> to vector<48x128xf32>
    %7 = arith.addf %4, %6 : vector<48x128xf32>
    %cst_8 = arith.constant 0.000000e+00 : f32
    %8 = vector.broadcast %cst_8 : f32 to vector<48x128xf32>
    %9 = arith.maximumf %7, %8 : vector<48x128xf32>
    %10 = arith.truncf %9 : vector<48x128xf32> to vector<48x128xbf16>
    %cst_9 = arith.constant dense<0.000000e+00> : vector<48x128xf32>
    %11 = tpu.matmul %0, %10, %cst_9 {dimension_numbers = #tpu.dot_dimension_numbers<[1], [0], [0], [1], [0, 0, 1, 1], [], []>} : vector<48x48xbf16>, vector<48x128xbf16>, vector<48x128xf32> -> vector<48x128xf32>
    %c0_10 = arith.constant 0 : index
    %c0_11 = arith.constant 0 : index
    %12 = vector.load %arg4[%c0_10, %c0_11] : memref<128x128xf32, #tpu.memory_space<vmem>>, vector<128x128xf32>
    %cst_12 = arith.constant dense<0.000000e+00> : vector<48x128xf32>
    %13 = tpu.matmul %11, %12, %cst_12 {dimension_numbers = #tpu.dot_dimension_numbers<[1], [0], [0], [1], [0, 0, 1, 1], [], []>} : vector<48x128xf32>, vector<128x128xf32>, vector<48x128xf32> -> vector<48x128xf32>
    %c0_13 = arith.constant 0 : index
    %c0_14 = arith.constant 0 : index
    %14 = vector.load %arg5[%c0_13, %c0_14] : memref<1x128xf32, #tpu.memory_space<vmem>>, vector<1x128xf32>
    %15 = vector.broadcast %14 : vector<1x128xf32> to vector<48x128xf32>
    %16 = arith.addf %13, %15 : vector<48x128xf32>
    %c0_15 = arith.constant 0 : index
    %c0_16 = arith.constant 0 : index
    %17 = vector.load %arg6[%c0_15, %c0_16] : memref<48x128xf32, #tpu.memory_space<vmem>>, vector<48x128xf32>
    tpu.vector_store %arg6[%c0_15, %c0_16], %16 {strides = array<i32>} : memref<48x128xf32, #tpu.memory_space<vmem>>, vector<48x128xf32>,
    return
  }
}

</mosaic_0001>

<bundles_post_ra>
// kernel: tpu_custom_call.1
= control target key start
LH: loop header
LB: loop body
LE: loop exit
PB: predicated region body
PF: predicated region fallthrough
CT: control target
= control target key end

     0   :  { %11 = vsyncpa [#allocation3], 0  ;;  %s1104_s0 = inlined_call_operand.hbm [shape: bf16[48,48], index: 0, kind: input, shape index: {}]   ;;  %s1105_s1 = inlined_call_operand.hbm [shape: bf16[48,128], index: 1, kind: input, shape index: {}]   ;;  %s1106_s2 = inlined_call_operand.hbm [shape: f32[128,128], index: 2, kind: input, shape index: {}]   ;;  %s1107_s3 = inlined_call_operand.vmem [shape: f32[1,128], index: 3, kind: input, shape index: {}]   ;;  %s1108_s4 = inlined_call_operand.hbm [shape: f32[128,128], index: 4, kind: input, shape index: {}]   ;;  %s1109_s5 = inlined_call_operand.vmem [shape: f32[1,128], index: 5, kind: input, shape index: {}]   ;;  %s1110_s6 = inlined_call_operand.hbm [shape: f32[48,128], index: 6, kind: output, shape index: {}]  }
   0x1   :  { %12 = vsyncpa [#allocation6], 0 }
   0x2   :  { %13 = vsyncpa [#allocation9], 0 }
   0x3   :  { %14 = vsyncpa [#allocation4], 0  ;;  %s922_s21 = smov [#allocation5]   ;;  %s923_s23 = smov [#allocation2]  }
   0x4   :  { %s32_s22 = sshll.u32 %s922_s21, 4  ;;  %s20_s24 = sshll.u32 %s923_s23, 4  ;;  %s33_s22 = int_to_ptr.vmem [resolvable:$true] %s32_s22  ;;  %s968_s24 = int_to_ptr.vmem [resolvable:$true] %s20_s24 }
   0x5   :  { %s804_s27 = scalar_lea.hbm %s1105_s1, 384 }
   0x6   :  { %p805_p0 = scmp.ne.s32.totalorder %s1105_s1, %s804_s27  ;;  %p808_p1 = scmp.lt.u32.totalorder %s804_s27, %s1105_s1 }
   0x8   :  { %p810_p2 = pnand %p808_p1, %p805_p0 }
   0xa   :  { %813 = shalt.err (!%p810_p2)
}
   0xb   :  { %s814_s8 = scalar_lea.vmem %s33_s22, 384  ;;  %p819_p4 = scmp.lt.s32.totalorder %s33_s22, %s33_s22 }
   0xc   :  { %p815_p3 = scmp.ne.s32.totalorder %s33_s22, %s814_s8  ;;  %p820_p5 = scmp.lt.s32.totalorder %s814_s8, %s814_s8 }
   0xe   :  { %p821_p6 = por %p820_p5, %p819_p4 }
  0x10   :  { %p822_p7 = pnand %p821_p6, %p815_p3 }
  0x12   :  { %825 = shalt.err (!%p822_p7)
}
  0x13   :  { %s924_s9 = smov 64   ;;  %s925_s10 = smov 4  }
  0x14   :  { %38 = dma.hbm_to_vmem [thread:$0]  %s1105_s1, 384, %s33_s22, [#allocation6], %s924_s9, %s924_s9, %s925_s10  }
  0x15   :  { %s826_s15 = scalar_lea.hbm %s1104_s0, 384 }
  0x16   :  { %p827_p8 = scmp.ne.s32.totalorder %s1104_s0, %s826_s15  ;;  %p830_p9 = scmp.lt.u32.totalorder %s826_s15, %s1104_s0 }
  0x18   :  { %p832_p10 = pnand %p830_p9, %p827_p8 }
  0x1a   :  { %835 = shalt.err (!%p832_p10)
}
  0x1b   :  { %s836_s20 = scalar_lea.vmem %s968_s24, 384  ;;  %p841_p12 = scmp.lt.s32.totalorder %s968_s24, %s968_s24 }
  0x1c   :  { %p837_p11 = scmp.ne.s32.totalorder %s968_s24, %s836_s20  ;;  %p842_p13 = scmp.lt.s32.totalorder %s836_s20, %s836_s20 }
  0x1e   :  { %p843_p0 = por %p842_p13, %p841_p12 }
  0x20   :  { %p844_p1 = pnand %p843_p0, %p837_p11 }
  0x22   :  { %847 = shalt.err (!%p844_p1)
}
  0x23   :  { %26 = dma.hbm_to_vmem [thread:$0]  %s1104_s0, 384, %s968_s24, [#allocation3], %s924_s9, %s924_s9, %s925_s10  }
  0x24   :  { %s926_s22 = smov [#allocation7]   ;;  %s848_s27 = scalar_lea.hbm %s1106_s2, 2048 }
  0x25   :  { %s44_s23 = sshll.u32 %s926_s22, 4  ;;  %p849_p2 = scmp.ne.s32.totalorder %s1106_s2, %s848_s27  ;;  %s45_s23 = int_to_ptr.vmem [resolvable:$true] %s44_s23 }
  0x26   :  { %p852_p3 = scmp.lt.u32.totalorder %s848_s27, %s1106_s2 }
  0x28   :  { %p854_p4 = pnand %p852_p3, %p849_p2 }
  0x2a   :  { %857 = shalt.err (!%p854_p4)
}
  0x2b   :  { %s858_s8 = scalar_lea.vmem %s45_s23, 2048  ;;  %p863_p6 = scmp.lt.s32.totalorder %s45_s23, %s45_s23 }
  0x2c   :  { %p859_p5 = scmp.ne.s32.totalorder %s45_s23, %s858_s8  ;;  %p864_p7 = scmp.lt.s32.totalorder %s858_s8, %s858_s8 }
  0x2e   :  { %p865_p8 = por %p864_p7, %p863_p6 }
  0x30   :  { %p866_p9 = pnand %p865_p8, %p859_p5 }
  0x32   :  { %869 = shalt.err (!%p866_p9)
}
  0x33   :  { %s927_s0 = smov 128   ;;  %s928_s24 = smov 8  }
  0x34   :  { %50 = dma.hbm_to_vmem [thread:$0]  %s1106_s2, 2048, %s45_s23, [#allocation6], %s927_s0, %s927_s0, %s928_s24  }
  0x35   :  { %s929_s11 = smov [#allocation8]   ;;  %s870_s15 = scalar_lea.hbm %s1108_s4, 2048 }
  0x36   :  { %s58_s12 = sshll.u32 %s929_s11, 4  ;;  %p871_p10 = scmp.ne.s32.totalorder %s1108_s4, %s870_s15  ;;  %s59_s12 = int_to_ptr.vmem [resolvable:$true] %s58_s12 }
  0x37   :  { %p874_p11 = scmp.lt.u32.totalorder %s870_s15, %s1108_s4 }
  0x39   :  { %p876_p12 = pnand %p874_p11, %p871_p10 }
  0x3b   :  { %879 = shalt.err (!%p876_p12)
}
  0x3c   :  { %s880_s20 = scalar_lea.vmem %s59_s12, 2048  ;;  %p885_p0 = scmp.lt.s32.totalorder %s59_s12, %s59_s12 }
  0x3d   :  { %p881_p13 = scmp.ne.s32.totalorder %s59_s12, %s880_s20  ;;  %p886_p1 = scmp.lt.s32.totalorder %s880_s20, %s880_s20 }
  0x3f   :  { %p887_p2 = por %p886_p1, %p885_p0 }
  0x41   :  { %p888_p3 = pnand %p887_p2, %p881_p13 }
  0x43   :  { %891 = shalt.err (!%p888_p3)
}
  0x44   :  { %64 = dma.hbm_to_vmem [thread:$0]  %s1108_s4, 2048, %s59_s12, [#allocation9], %s927_s0, %s927_s0, %s928_s24  }
  0x45   :  { %914 = dma.done.wait [#allocation3], 384  }
  0x46   :  { %915 = vsyncadd [#allocation3], 4294966912 }
  0x47   :  { %916 = dma.done.wait [#allocation6], 2432  }
  0x48   :  { %917 = vsyncadd [#allocation6], 4294964864 }
  0x49   :  { %918 = dma.done.wait [#allocation9], 2048  }
  0x4a   :  { %919 = vsyncadd [#allocation9], 4294965248  ;;  %v930_v0 = vmov 0.0   ;;  %vm931_vm0 = vmmov 0   ;;  %v798_v1 = vld [vmem:[#allocation5] sm:$0xff]   ;;  %v799_v2 = vld [vmem:[#allocation5 + $0x8] sm:$0xff]  }
  0x4b   :  { %589 = vmatprep.subr.bf16.mxu0 %v930_v0  ;;  %595 = vmatprep.mubr.msk.bf16.mxu0 %vm931_vm0, %v930_v0  ;;  %v800_v3 = vld [vmem:[#allocation5 + $0x10] sm:$0xff]   ;;  %v192_v4 = vld [vmem:[#allocation7] sm:$0xff]  ;;  %v193_v5 = vld [vmem:[#allocation7 + $0x8] sm:$0xff]  ;;  %vm125_vm1 = vcmask 392192   ;;  %s932_s23 = smov [#allocation10]  }
  0x4c   :  { %590 = vmatpush3.bf16.msra.mxu0 %v798_v1  ;;  %v194_v6 = vld [vmem:[#allocation7 + $0x10] sm:$0xff]  ;;  %v707_v7 = vpack.c.bf16 %v193_v5, %v192_v4  ;;  %v195_v8 = vld [vmem:[#allocation7 + $0x18] sm:$0xff]  ;;  %v196_v10 = vld [vmem:[#allocation7 + $0x20] sm:$0xff]  ;;  %s505_s25 = sshll.u32 %s932_s23, 4  ;;  %s506_s25 = int_to_ptr.vmem [resolvable:$true] %s505_s25 }
  0x4d   :  { %591 = vmatprep.subr.bf16.mxu0 %v930_v0  ;;  %v711_v9 = vpack.c.bf16 %v195_v8, %v194_v6  ;;  %v197_v11 = vld [vmem:[#allocation7 + $0x28] sm:$0xff]  ;;  %v1034_v12 = vld [vmem:[#allocation2] sm:$0xff]   ;;  %v199_v15 = vld [vmem:[#allocation7 + $0x38] sm:$0xff]  ;;  %p897_p5 = scmp.lt.s32.totalorder %s506_s25, %s506_s25 }
  0x4e   :  { %708 = vmatprep.subr.bf16.mxu1 %v707_v7  ;;  %v715_v13 = vpack.c.bf16 %v197_v11, %v196_v10  ;;  %v198_v14 = vld [vmem:[#allocation7 + $0x30] sm:$0xff]  ;;  %v200_v17 = vld [vmem:[#allocation7 + $0x40] sm:$0xff]  ;;  %v201_v18 = vld [vmem:[#allocation7 + $0x48] sm:$0xff] }
  0x4f   :  { %710 = vmatpush3.bf16.msra.mxu1 %v707_v7  ;;  %v719_v16 = vpack.c.bf16 %v199_v15, %v198_v14  ;;  %v1041_v19 = vld [vmem:[#allocation2 + $0x8] sm:$0xff]   ;;  %v723_v20 = vpack.c.bf16 %v201_v18, %v200_v17  ;;  %v202_v21 = vld [vmem:[#allocation7 + $0x50] sm:$0xff]  ;;  %v204_v24 = vld [vmem:[#allocation7 + $0x60] sm:$0xff] }
  0x50   :  { %592 = vmatpush3.bf16.msra.mxu0 %v799_v2  ;;  %712 = vmatprep.subr.bf16.mxu1 %v711_v9  ;;  %v203_v22 = vld [vmem:[#allocation7 + $0x58] sm:$0xff]  ;;  %v205_v25 = vld [vmem:[#allocation7 + $0x68] sm:$0xff]  ;;  %v1047_v26 = vld [vmem:[#allocation2 + $0x10] sm:$0xff]  }
  0x51   :  { %593 = vmatprep.subr.bf16.mxu0 %v930_v0  ;;  %v727_v23 = vpack.c.bf16 %v203_v22, %v202_v21  ;;  %v731_v27 = vpack.c.bf16 %v205_v25, %v204_v24  ;;  %v206_v28 = vld [vmem:[#allocation7 + $0x70] sm:$0xff]  ;;  %v207_v29 = vld [vmem:[#allocation7 + $0x78] sm:$0xff]  ;;  %v376_v43 = vld [vmem:[#allocation8] sm:$0xff] }
  0x52   :  { %v735_v30 = vpack.c.bf16 %v207_v29, %v206_v28  ;;  %v377_v44 = vld [vmem:[#allocation8 + $0x8] sm:$0xff]  ;;  %v378_v45 = vld [vmem:[#allocation8 + $0x10] sm:$0xff]  ;;  %v379_v47 = vld [vmem:[#allocation8 + $0x18] sm:$0xff] }
  0x53   :  { %714 = vmatpush3.bf16.msra.mxu1 %v711_v9  ;;  %v1053_v46 = vpack.c.bf16 %v377_v44, %v376_v43  ;;  %v1055_v48 = vpack.c.bf16 %v379_v47, %v378_v45  ;;  %v380_v49 = vld [vmem:[#allocation8 + $0x20] sm:$0xff]  ;;  %v381_v50 = vld [vmem:[#allocation8 + $0x28] sm:$0xff]  ;;  %v382_v52 = vld [vmem:[#allocation8 + $0x30] sm:$0xff] }
  0x54   :  { %594 = vmatpush3.bf16.msra.mxu0 %v800_v3  ;;  %716 = vmatprep.subr.bf16.mxu1 %v715_v13  ;;  %v1060_v51 = vpack.c.bf16 %v381_v50, %v380_v49  ;;  %v383_v53 = vld [vmem:[#allocation8 + $0x38] sm:$0xff]  ;;  %v384_v55 = vld [vmem:[#allocation8 + $0x40] sm:$0xff]  ;;  %v385_v56 = vld [vmem:[#allocation8 + $0x48] sm:$0xff] }
  0x55   :  { %648 = vmatprep.subr.bf16.mxu0 %v930_v0  ;;  %v751_v54 = vpack.c.bf16 %v383_v53, %v382_v52  ;;  %v755_v57 = vpack.c.bf16 %v385_v56, %v384_v55  ;;  %v386_v58 = vld [vmem:[#allocation8 + $0x50] sm:$0xff]  ;;  %v387_v59 = vld [vmem:[#allocation8 + $0x58] sm:$0xff]  ;;  %v388_v61 = vld [vmem:[#allocation8 + $0x60] sm:$0xff] }
  0x56   :  { %v759_v60 = vpack.c.bf16 %v387_v59, %v386_v58  ;;  %v389_v62 = vld [vmem:[#allocation8 + $0x68] sm:$0xff]  ;;  %v390_v1 = vld [vmem:[#allocation8 + $0x70] sm:$0xff]  ;;  %v391_v2 = vld [vmem:[#allocation8 + $0x78] sm:$0xff] }
  0x57   :  { %596 = vmatmul.mubr.msk.bf16.vlgmr.msra.gmra.mrb[0].mxu0 %vm125_vm1, %v1034_v12  ;;  %718 = vmatpush3.bf16.msra.mxu1 %v715_v13  ;;  %v763_v63 = vpack.c.bf16 %v389_v62, %v388_v61  ;;  %v767_v3 = vpack.c.bf16 %v391_v2, %v390_v1  ;;  %v528_v4 = vld [vmem:[%s1107_s3] ss:$0 sm:$0xff] }
  0x58   :  { %599 = vmatprep.mubr.msk.bf16.mxu0 %vm931_vm0, %v930_v0  ;;  %720 = vmatprep.subr.bf16.mxu1 %v719_v16 }
  0x5b   :  { %722 = vmatpush3.bf16.msra.mxu1 %v719_v16 }
  0x5c   :  { %724 = vmatprep.subr.bf16.mxu1 %v723_v20 }
  0x5f   :  { %600 = vmatmul.mubr.msk.bf16.gmra.mrb[4].mxu0 %vm125_vm1, %v1041_v19  ;;  %726 = vmatpush3.bf16.msra.mxu1 %v723_v20 }
  0x60   :  { %603 = vmatprep.mubr.msk.bf16.mxu0 %vm931_vm0, %v930_v0  ;;  %728 = vmatprep.subr.bf16.mxu1 %v727_v23 }
  0x63   :  { %730 = vmatpush3.bf16.msra.mxu1 %v727_v23 }
  0x64   :  { %732 = vmatprep.subr.bf16.mxu1 %v731_v27 }
  0x67   :  { %604 = vmatmul.mubr.msk.bf16.gmra.mrb[8].mxu0 %vm125_vm1, %v1047_v26  ;;  %734 = vmatpush3.bf16.msra.mxu1 %v731_v27 }
  0x68   :  { %654 = vmatprep.mubr.msk.bf16.mxu0 %vm931_vm0, %v930_v0  ;;  %736 = vmatprep.subr.bf16.mxu1 %v735_v30 }
  0x6b   :  { %738 = vmatpush3.bf16.msra.mxu1 %v735_v30 }
  0x6c   :  { %771 = vmatprep.subr.bf16.mxu1 %v1053_v46 }
 0x12a   :  { %v169_v31 = vpop.f32.mrb[0].mxu0 }
 0x12b   :  { %v597_v32 = vpop.f32.mrb[1].mxu0  ;;  %639 = vmatprep.mubr.f32.mxu1 %v169_v31 }
 0x12c   :  { %v172_v33 = vpop.f32.mrb[2].mxu0 }
 0x12d   :  { %v598_v34 = vpop.f32.mrb[3].mxu0  ;;  %640 = vmatmul.mubr.f32.vlgmr.msra.gmra.mrb[0].mxu1 %v172_v33 }
 0x12e   :  { %779 = vmatpush3.bf16.msra.mxu1 %v1053_v46 }
 0x12f   :  { %772 = vmatprep.subr.bf16.mxu1 %v1055_v48 }
 0x132   :  { %v177_v35 = vpop.f32.mrb[4].mxu0  ;;  %780 = vmatpush3.bf16.msra.mxu1 %v1055_v48 }
 0x133   :  { %v601_v36 = vpop.f32.mrb[5].mxu0  ;;  %642 = vmatprep.mubr.f32.mxu1 %v177_v35  ;;  %773 = vmatprep.subr.bf16.mxu1 %v1060_v51 }
 0x134   :  { %v180_v37 = vpop.f32.mrb[6].mxu0 }
 0x135   :  { %v602_v38 = vpop.f32.mrb[7].mxu0  ;;  %643 = vmatmul.mubr.f32.gmra.mrb[2].mxu1 %v180_v37  ;;  %v532_v37 = vld [vmem:[%s1109_s5] ss:$0 sm:$0xff]  ;;  %s892_s5 = scalar_lea.vmem %s506_s25, 768 }
 0x136   :  { %781 = vmatpush3.bf16.msra.mxu1 %v1060_v51  ;;  %p893_p4 = scmp.ne.s32.totalorder %s506_s25, %s892_s5  ;;  %p898_p6 = scmp.lt.s32.totalorder %s892_s5, %s892_s5 }
 0x137   :  { %774 = vmatprep.subr.bf16.mxu1 %v751_v54 }
 0x138   :  { %p899_p7 = por %p898_p6, %p897_p5 }
 0x13a   :  { %v185_v39 = vpop.f32.mrb[8].mxu0  ;;  %782 = vmatpush3.bf16.msra.mxu1 %v751_v54  ;;  %p900_p8 = pnand %p899_p7, %p893_p4 }
 0x13b   :  { %v605_v40 = vpop.f32.mrb[9].mxu0  ;;  %645 = vmatprep.mubr.f32.mxu1 %v185_v39  ;;  %775 = vmatprep.subr.bf16.mxu1 %v755_v57 }
 0x13c   :  { %v188_v41 = vpop.f32.mrb[10].mxu0 }
 0x13d   :  { %v606_v42 = vpop.f32.mrb[11].mxu0  ;;  %646 = vmatmul.mubr.f32.gmra.mrb[4].mxu1 %v188_v41 }
 0x13e   :  { %783 = vmatpush3.bf16.msra.mxu1 %v755_v57 }
 0x13f   :  { %776 = vmatprep.subr.bf16.mxu1 %v759_v60 }
 0x142   :  { %784 = vmatpush3.bf16.msra.mxu1 %v759_v60 }
 0x143   :  { %777 = vmatprep.subr.bf16.mxu1 %v763_v63 }
 0x146   :  { %785 = vmatpush3.bf16.msra.mxu1 %v763_v63 }
 0x147   :  { %778 = vmatprep.subr.bf16.mxu1 %v767_v3 }
 0x14a   :  { %786 = vmatpush3.bf16.msra.mxu1 %v767_v3 }
 0x200   :  { %v641_v5 = vpop.f32.mrb[0].mxu1 }
 0x201   :  { %v287_v6 = vadd.f32 %v641_v5, %v528_v4  ;;  %v281_v7 = vpop.f32.mrb[1].mxu1 }
 0x202   :  { %v282_v8 = vadd.f32 %v528_v4, %v281_v7 }
 0x203   :  { %v311_v9 = vmax.f32 %v287_v6, 0.0 }
 0x204   :  { %v310_v10 = vmax.f32 %v282_v8, 0.0 }
 0x206   :  { %v316_v11 = vpack.c.bf16 %v311_v9, %v310_v10 }
 0x208   :  { %v644_v13 = vpop.f32.mrb[2].mxu1  ;;  %649 = vmatpush3.bf16.msra.mxu0 %v316_v11 }
 0x209   :  { %v297_v14 = vadd.f32 %v644_v13, %v528_v4  ;;  %v291_v15 = vpop.f32.mrb[3].mxu1  ;;  %650 = vmatprep.subr.bf16.mxu0 %v930_v0 }
 0x20a   :  { %v292_v16 = vadd.f32 %v528_v4, %v291_v15 }
 0x20b   :  { %v313_v17 = vmax.f32 %v297_v14, 0.0 }
 0x20c   :  { %v312_v18 = vmax.f32 %v292_v16, 0.0 }
 0x20e   :  { %v317_v20 = vpack.c.bf16 %v313_v17, %v312_v18 }
 0x210   :  { %v647_v21 = vpop.f32.mrb[4].mxu1  ;;  %651 = vmatpush3.bf16.msra.mxu0 %v317_v20 }
 0x211   :  { %v307_v22 = vadd.f32 %v647_v21, %v528_v4  ;;  %v301_v23 = vpop.f32.mrb[5].mxu1  ;;  %652 = vmatprep.subr.bf16.mxu0 %v930_v0 }
 0x212   :  { %v302_v24 = vadd.f32 %v528_v4, %v301_v23 }
 0x213   :  { %v315_v25 = vmax.f32 %v307_v22, 0.0 }
 0x214   :  { %v314_v27 = vmax.f32 %v302_v24, 0.0 }
 0x216   :  { %v318_v28 = vpack.c.bf16 %v315_v25, %v314_v27 }
 0x218   :  { %653 = vmatpush3.bf16.msra.mxu0 %v318_v28 }
 0x219   :  { %740 = vmatprep.subr.bf16.mxu0 %v1053_v46 }
 0x21b   :  { %655 = vmatmul.mubr.msk.bf16.vlgmr.msra.gmra.mrb[12].mxu0 %vm125_vm1, %v1034_v12 }
 0x21c   :  { %658 = vmatprep.mubr.msk.bf16.mxu0 %vm931_vm0, %v930_v0  ;;  %742 = vmatpush3.bf16.msra.mxu0 %v1053_v46 }
 0x21d   :  { %744 = vmatprep.subr.bf16.mxu0 %v1055_v48 }
 0x220   :  { %746 = vmatpush3.bf16.msra.mxu0 %v1055_v48 }
 0x221   :  { %748 = vmatprep.subr.bf16.mxu0 %v1060_v51 }
 0x223   :  { %659 = vmatmul.mubr.msk.bf16.gmra.mrb[16].mxu0 %vm125_vm1, %v1041_v19 }
 0x224   :  { %662 = vmatprep.mubr.msk.bf16.mxu0 %vm931_vm0, %v930_v0  ;;  %750 = vmatpush3.bf16.msra.mxu0 %v1060_v51 }
 0x225   :  { %752 = vmatprep.subr.bf16.mxu0 %v751_v54 }
 0x228   :  { %754 = vmatpush3.bf16.msra.mxu0 %v751_v54 }
 0x229   :  { %756 = vmatprep.subr.bf16.mxu0 %v755_v57 }
 0x22b   :  { %663 = vmatmul.mubr.msk.bf16.gmra.mrb[20].mxu0 %vm125_vm1, %v1047_v26 }
 0x22c   :  { %758 = vmatpush3.bf16.msra.mxu0 %v755_v57 }
 0x22d   :  { %760 = vmatprep.subr.bf16.mxu0 %v759_v60 }
 0x230   :  { %762 = vmatpush3.bf16.msra.mxu0 %v759_v60 }
 0x231   :  { %764 = vmatprep.subr.bf16.mxu0 %v763_v63 }
 0x234   :  { %766 = vmatpush3.bf16.msra.mxu0 %v763_v63 }
 0x235   :  { %768 = vmatprep.subr.bf16.mxu0 %v767_v3 }
 0x238   :  { %770 = vmatpush3.bf16.msra.mxu0 %v767_v3 }
 0x2ee   :  { %v353_v12 = vpop.f32.mrb[12].mxu0 }
 0x2ef   :  { %v656_v19 = vpop.f32.mrb[13].mxu0  ;;  %698 = vmatprep.mubr.f32.mxu0 %v353_v12 }
 0x2f0   :  { %v356_v29 = vpop.f32.mrb[14].mxu0 }
 0x2f1   :  { %v657_v0 = vpop.f32.mrb[15].mxu0  ;;  %699 = vmatmul.mubr.f32.vlgmr.msra.gmra.mrb[24].mxu0 %v356_v29 }
 0x2f6   :  { %v361_v30 = vpop.f32.mrb[16].mxu0 }
 0x2f7   :  { %v660_v31 = vpop.f32.mrb[17].mxu0  ;;  %701 = vmatprep.mubr.f32.mxu1 %v361_v30 }
 0x2f8   :  { %v364_v32 = vpop.f32.mrb[18].mxu0 }
 0x2f9   :  { %v661_v33 = vpop.f32.mrb[19].mxu0  ;;  %702 = vmatmul.mubr.f32.vlgmr.msra.gmra.mrb[6].mxu1 %v364_v32 }
 0x2fe   :  { %v369_v26 = vpop.f32.mrb[20].mxu0 }
 0x2ff   :  { %v664_v34 = vpop.f32.mrb[21].mxu0  ;;  %704 = vmatprep.mubr.f32.mxu1 %v369_v26 }
 0x300   :  { %v372_v35 = vpop.f32.mrb[22].mxu0 }
 0x301   :  { %v665_v36 = vpop.f32.mrb[23].mxu0  ;;  %705 = vmatmul.mubr.f32.gmra.mrb[8].mxu1 %v372_v35 }
 0x3c4   :  { %v700_v38 = vpop.f32.mrb[24].mxu0 }
 0x3c5   :  { %v471_v39 = vadd.f32 %v700_v38, %v532_v37  ;;  %v465_v40 = vpop.f32.mrb[25].mxu0 }
 0x3c6   :  { %v466_v41 = vadd.f32 %v532_v37, %v465_v40 }
 0x3c7   :  { %495 = vst [vmem:[#allocation10 + $0x8] sm:$0xff] %v471_v39 }
 0x3c8   :  { %494 = vst [vmem:[#allocation10] sm:$0xff] %v466_v41 }
 0x3cc   :  { %v703_v42 = vpop.f32.mrb[6].mxu1 }
 0x3cd   :  { %v481_v43 = vadd.f32 %v703_v42, %v532_v37  ;;  %v475_v44 = vpop.f32.mrb[7].mxu1 }
 0x3ce   :  { %v476_v45 = vadd.f32 %v532_v37, %v475_v44 }
 0x3cf   :  { %497 = vst [vmem:[#allocation10 + $0x18] sm:$0xff] %v481_v43 }
 0x3d0   :  { %496 = vst [vmem:[#allocation10 + $0x10] sm:$0xff] %v476_v45 }
 0x3d4   :  { %v706_v46 = vpop.f32.mrb[8].mxu1 }
 0x3d5   :  { %v491_v47 = vadd.f32 %v706_v46, %v532_v37  ;;  %v485_v48 = vpop.f32.mrb[9].mxu1 }
 0x3d6   :  { %v486_v49 = vadd.f32 %v532_v37, %v485_v48 }
 0x3d7   :  { %499 = vst [vmem:[#allocation10 + $0x28] sm:$0xff] %v491_v47 }
 0x3d8   :  { %498 = vst [vmem:[#allocation10 + $0x20] sm:$0xff] %v486_v49 }
 0x3d9   :  { %903 = shalt.err (!%p900_p8)
}
 0x3da   :  { %s904_s28 = scalar_lea.hbm %s1110_s6, 768 }
 0x3db   :  { %p905_p9 = scmp.ne.s32.totalorder %s1110_s6, %s904_s28  ;;  %p908_p10 = scmp.lt.u32.totalorder %s904_s28, %s1110_s6 }
 0x3dd   :  { %p910_p11 = pnand %p908_p10, %p905_p9 }
 0x3df   :  { %913 = shalt.err (!%p910_p11)
}
 0x3e0   :  { %511 = dma.vmem_to_hbm [thread:$0]  %s506_s25, 768, %s1110_s6, [#allocation4], %s927_s0, %s927_s0, %s928_s24  }
 0x3e1   :  { %920 = dma.done.wait [#allocation4], 768  }
 0x3e2   :  { %921 = vsyncadd [#allocation4], 4294966528 }
 0x3e3   :  { %515 = vsyncpa [#allocation3], 1 }
 0x3e4   :  { %516 = vsyncpa [#allocation6], 1 }
 0x3e5   :  { %517 = vsyncpa [#allocation9], 1 }
 0x3e6   :  { %518 = vsyncpa [#allocation4], 1 }

</bundles_post_ra>
